<compile_context>
chip_gen: v7x
topology: tpu7x:2x2x1
jax: 0.10.0
libtpu: 0.0.40
codegen_flags: <defaults>
</compile_context>

<pallas_src>
import functools
from math import sqrt

import jax
import jax.numpy as jnp
from jax import lax
from jax.experimental import pallas as pl
from jax.experimental.pallas import tpu as pltpu


# ---------------------------------------------------------------------------
# Trace-time per-generation configuration.
# ---------------------------------------------------------------------------
def _tpu_config():
    """Returns (vmem_limit_bytes, tq_target, tk_target, use_bf16_exp)."""
    try:
        vmem_bytes = int(pltpu.get_tpu_info().vmem_capacity_bytes)
    except Exception:
        vmem_bytes = 64 * 1024 * 1024          # conservative (v7x-sized)
    try:
        kind = jax.devices()[0].device_kind.lower()
    except Exception:
        kind = ""

    newer = ("v6" in kind) or ("v7" in kind)
    # ~85% of physical VMEM: ~108 MiB on v5e/v6e (128 MiB), ~54 MiB on v7x.
    vmem_limit = max(32 * 1024 * 1024, int(vmem_bytes * 0.85))
    tq_target = 512
    tk_target = 256 if newer else 128          # match 2x256^2 vs 4x128^2 MXU depth
    use_bf16_exp = newer                       # bf16 EUP only on v6e / v7x
    return vmem_limit, tq_target, tk_target, use_bf16_exp


def _pick_tile(n, target):
    """Largest tile <= target dividing n, stepping down by 128; else n itself."""
    if n <= target:
        return n
    t = target
    while t >= 128:
        if n % t == 0:
            return t
        t -= 128
    return n


# ---------------------------------------------------------------------------
# Hoisted K/V projection kernel: (R, E) @ (E, H) -> (R, H) bf16, no bias.
# ---------------------------------------------------------------------------
def _project_kernel(x_ref, w_ref, o_ref):
    o_ref[...] = jnp.dot(x_ref[...], w_ref[...],
                         preferred_element_type=jnp.float32).astype(o_ref.dtype)


def _project(x2d, w, *, tr_target, vmem_limit):
    R, E = x2d.shape
    H = w.shape[1]
    tr = _pick_tile(R, tr_target)
    return pl.pallas_call(
        _project_kernel,
        out_shape=jax.ShapeDtypeStruct((R, H), jnp.bfloat16),
        grid_spec=pltpu.PrefetchScalarGridSpec(
            num_scalar_prefetch=0,
            grid=(R // tr,),
            in_specs=[pl.BlockSpec((tr, E), lambda i: (i, 0)),
                      pl.BlockSpec((E, H), lambda i: (0, 0))],
            out_specs=pl.BlockSpec((tr, H), lambda i: (i, 0))),
        compiler_params=pltpu.CompilerParams(
            dimension_semantics=("parallel",),
            vmem_limit_bytes=vmem_limit),
    )(x2d, w)


# ---------------------------------------------------------------------------
# Flash-style attention over pre-projected K/V.
# ---------------------------------------------------------------------------
def _attention_head_kernel(q_ref, kp_ref, vp_ref, wq_ref, bq_ref, bv_ref,
                           o_ref,
                           qp_scratch, m_scratch, l_scratch, acc_scratch,
                           *, scale, use_bf16_exp):
    kv = pl.program_id(2)

    @pl.when(kv == 0)
    def _init():
        # Project the query tile once per (batch, q-tile); fold bias + scale,
        # store bf16 (its only consumer is the bf16 scores matmul).
        q_p = jnp.dot(q_ref[0], wq_ref[...],
                      preferred_element_type=jnp.float32)           # (tq, H) f32
        qp_scratch[...] = ((q_p + bq_ref[...]) * scale).astype(jnp.bfloat16)
        m_scratch[...] = jnp.full_like(m_scratch, -jnp.inf)
        l_scratch[...] = jnp.zeros_like(l_scratch)
        acc_scratch[...] = jnp.zeros_like(acc_scratch)

    k_p = kp_ref[0]                                                  # (tk, H) bf16
    v_p = vp_ref[0]                                                  # (tk, H) bf16

    # scores = q_p @ k_p^T via a trans-B contraction (no transpose relayout).
    s = lax.dot_general(qp_scratch[...], k_p,
                        dimension_numbers=(((1,), (1,)), ((), ())),
                        preferred_element_type=jnp.float32)          # (tq, tk) f32

    # TODO(synk): optional query_mask/key_mask/mask path (masked_fill with -inf
    # before the softmax) is not implemented; the module's default forward is
    # unmasked.

    # Online-softmax (flash) update; m / l / acc stay in f32.
    m_prev = m_scratch[...]
    m_new = jnp.maximum(m_prev, jnp.max(s, axis=-1, keepdims=True))
    alpha = jnp.exp(m_prev - m_new)
    if use_bf16_exp:
        # bf16 EUP path (v6e / v7x): p feeds the bf16 PV matmul anyway; the
        # softmax denominator is still accumulated in f32.
        p = jnp.exp((s - m_new).astype(jnp.bfloat16))
        l_inc = jnp.sum(p.astype(jnp.float32), axis=-1, keepdims=True)
        pv = jnp.dot(p, v_p, preferred_element_type=jnp.float32)
    else:
        p = jnp.exp(s - m_new)
        l_inc = jnp.sum(p, axis=-1, keepdims=True)
        pv = jnp.dot(p.astype(jnp.bfloat16), v_p,
                     preferred_element_type=jnp.float32)
    l_scratch[...] = alpha * l_scratch[...] + l_inc
    acc_scratch[...] = alpha * acc_scratch[...] + pv
    m_scratch[...] = m_new

    @pl.when(kv == pl.num_programs(2) - 1)
    def _finalize():
        # Exact reciprocal: runs once per q tile, negligible cost, better
        # parity with the f32 reference than approx=True.
        inv_l = pl.reciprocal(l_scratch[...], approx=False)
        # Value bias added here: softmax rows sum to 1 => out = acc/l + bv.
        o_ref[0] = (acc_scratch[...] * inv_l + bv_ref[...]).astype(o_ref.dtype)


def attention_head(query, key, value, wq, bq, wk, bk, wv, bv):
    """query/key/value: (B, S, E) f32; wX: (E, H); bX: (H,). Returns (B, S, H) f32."""
    B, S, E = query.shape
    H = wq.shape[1]
    scale = 1.0 / sqrt(float(H))

    vmem_limit, tq_target, tk_target, use_bf16_exp = _tpu_config()
    tq = _pick_tile(S, tq_target)
    # Keep >= 2 tiles on the parallel axes so v7x's second TensorCore has work.
    while B * (S // tq) < 2 and tq % 2 == 0 and (tq // 2) % 8 == 0:
        tq //= 2
    tk = _pick_tile(S, tk_target)

    # bf16 MXU operands (accumulation stays f32 in-kernel); biases stay f32.
    qb = query.astype(jnp.bfloat16)
    wq_b = wq.astype(jnp.bfloat16)
    bq2 = bq.reshape(1, H).astype(jnp.float32)
    bv2 = bv.reshape(1, H).astype(jnp.float32)

    # K/V projections hoisted out of the kv loop (each row projected once).
    # Key bias bk is dropped exactly (softmax shift-invariance per query row);
    # value bias bv is deferred to the attention kernel's finalize block.
    del bk
    k_p = _project(key.astype(jnp.bfloat16).reshape(B * S, E),
                   wk.astype(jnp.bfloat16),
                   tr_target=tq_target, vmem_limit=vmem_limit).reshape(B, S, H)
    v_p = _project(value.astype(jnp.bfloat16).reshape(B * S, E),
                   wv.astype(jnp.bfloat16),
                   tr_target=tq_target, vmem_limit=vmem_limit).reshape(B, S, H)

    kernel = functools.partial(_attention_head_kernel,
                               scale=scale, use_bf16_exp=use_bf16_exp)

    q_spec = pl.BlockSpec((1, tq, E), lambda b, qi, ki: (b, qi, 0))
    kv_spec = pl.BlockSpec((1, tk, H), lambda b, qi, ki: (b, ki, 0))
    # Constant index_map -> wq / biases fetched once and stay resident.
    # TODO(synk): on v7x, pipeline_mode=pl.Buffered(1) on these resident specs
    # would reclaim their double-buffer VMEM; left default for portability.
    wq_spec = pl.BlockSpec((E, H), lambda b, qi, ki: (0, 0))
    b_spec = pl.BlockSpec((1, H), lambda b, qi, ki: (0, 0))
    out_spec = pl.BlockSpec((1, tq, H), lambda b, qi, ki: (b, qi, 0))
    # TODO(synk): with a single head H < 128 the output store is lane-masked;
    # fusing multiple heads (last dim >= 128) would make it lane-dense.

    return pl.pallas_call(
        kernel,
        out_shape=jax.ShapeDtypeStruct((B, S, H), jnp.float32),
        grid_spec=pltpu.PrefetchScalarGridSpec(
            num_scalar_prefetch=0,
            grid=(B, S // tq, S // tk),
            in_specs=[q_spec, kv_spec, kv_spec, wq_spec, b_spec, b_spec],
            out_specs=out_spec,
            scratch_shapes=[
                pltpu.VMEM((tq, H), jnp.bfloat16),   # scaled, biased q projection
                pltpu.VMEM((tq, 1), jnp.float32),    # running max m
                pltpu.VMEM((tq, 1), jnp.float32),    # running denom l
                pltpu.VMEM((tq, H), jnp.float32),    # output accumulator
            ]),
        compiler_params=pltpu.CompilerParams(
            dimension_semantics=("parallel", "parallel", "arbitrary"),
            vmem_limit_bytes=vmem_limit),
    )(qb, k_p, v_p, wq_b, bq2, bv2)


def _init_linear(key, in_dim, out_dim):
    # Deterministic init mimicking torch.nn.Linear default: U(-1/sqrt(in), 1/sqrt(in)).
    kw, kb = jax.random.split(key)
    bound = 1.0 / sqrt(float(in_dim))
    w = jax.random.uniform(kw, (in_dim, out_dim), jnp.float32, -bound, bound)
    b = jax.random.uniform(kb, (out_dim,), jnp.float32, -bound, bound)
    return w, b


if __name__ == "__main__":
    B, S, E, H = 2, 8, 32, 16

    root = jax.random.PRNGKey(0)
    k_q, k_k, k_v, k_wq, k_wk, k_wv = jax.random.split(root, 6)

    query = jax.random.normal(k_q, (B, S, E), jnp.float32)
    key = jax.random.normal(k_k, (B, S, E), jnp.float32)
    value = jax.random.normal(k_v, (B, S, E), jnp.float32)

    wq, bq = _init_linear(k_wq, E, H)
    wk, bk = _init_linear(k_wk, E, H)
    wv, bv = _init_linear(k_wv, E, H)

    out = attention_head(query, key, value, wq, bq, wk, bk, wv, bv)
    out = jax.block_until_ready(out)

    # Pure-JAX f32 reference (same math as the PyTorch module, biases included;
    # bk is mathematically a no-op through the softmax).  Tolerance is relaxed
    # because the kernel uses bf16 MXU operands.
    q_p = query @ wq + bq
    k_pr = key @ wk + bk
    v_pr = value @ wv + bv
    scores = jnp.einsum("bqd,bkd->bqk", q_p, k_pr) / sqrt(float(H))
    ref = jnp.einsum("bqk,bkd->bqd", jax.nn.softmax(scores, axis=-1), v_pr)
    assert out.shape == (B, S, H)
    assert jnp.allclose(out, ref, atol=3e-2, rtol=3e-2), (
        float(jnp.max(jnp.abs(out - ref))))

    print("KERNEL_OK")
</pallas_src>

<mosaic_0001>
module attributes {stable_mosaic.version = 11 : i64} {
  func.func @_project_kernel(%arg0: i32, %arg1: memref<16x32xbf16, #tpu.memory_space<vmem>>, %arg2: memref<32x16xbf16, #tpu.memory_space<vmem>>, %arg3: memref<16x16xbf16, #tpu.memory_space<vmem>>) attributes {dimension_semantics = [#tpu.dimension_semantics<parallel>], iteration_bounds = array<i64: 1>, scalar_prefetch = 0 : i64, scratch_operands = 0 : i64, tpu.core_type = #tpu.core_type<tc>, window_params = [{transform_indices = @transform_0, window_bounds = array<i64: 16, 32>}, {pipeline_mode = #tpu.pipeline_mode<synchronous>, transform_indices = @transform_1, window_bounds = array<i64: 32, 16>}, {transform_indices = @transform_2, window_bounds = array<i64: 16, 16>}]} {
    %c0 = arith.constant 0 : index
    %c0_0 = arith.constant 0 : index
    %0 = vector.load %arg1[%c0, %c0_0] : memref<16x32xbf16, #tpu.memory_space<vmem>>, vector<16x32xbf16>
    %c0_1 = arith.constant 0 : index
    %c0_2 = arith.constant 0 : index
    %1 = vector.load %arg2[%c0_1, %c0_2] : memref<32x16xbf16, #tpu.memory_space<vmem>>, vector<32x16xbf16>
    %cst = arith.constant dense<0.000000e+00> : vector<16x16xf32>
    %2 = tpu.matmul %0, %1, %cst {dimension_numbers = #tpu.dot_dimension_numbers<[1], [0], [0], [1], [0, 0, 1, 1], [], []>} : vector<16x32xbf16>, vector<32x16xbf16>, vector<16x16xf32> -> vector<16x16xf32>
    %3 = arith.truncf %2 : vector<16x16xf32> to vector<16x16xbf16>
    %c0_3 = arith.constant 0 : index
    %c0_4 = arith.constant 0 : index
    %4 = vector.load %arg3[%c0_3, %c0_4] : memref<16x16xbf16, #tpu.memory_space<vmem>>, vector<16x16xbf16>
    tpu.vector_store %arg3[%c0_3, %c0_4], %3 {strides = array<i32>} : memref<16x16xbf16, #tpu.memory_space<vmem>>, vector<16x16xbf16>,
    return
  }
  func.func @transform_0(%arg0: i32) -> (i32, i32) {
    %c0_i32 = arith.constant 0 : i32
    %c0_i32_0 = arith.constant 0 : i32
    return %arg0, %c0_i32 : i32, i32
  }
  func.func @transform_1(%arg0: i32) -> (i32, i32) {
    %c0_i32 = arith.constant 0 : i32
    %c0_i32_0 = arith.constant 0 : i32
    %c0_i32_1 = arith.constant 0 : i32
    return %c0_i32, %c0_i32_0 : i32, i32
  }
  func.func @transform_2(%arg0: i32) -> (i32, i32) {
    %c0_i32 = arith.constant 0 : i32
    %c0_i32_0 = arith.constant 0 : i32
    return %arg0, %c0_i32 : i32, i32
  }
}

</mosaic_0001>

<bundles_post_ra>
// kernel: tpu_custom_call.1
= control target key start
LH: loop header
LB: loop body
LE: loop exit
PB: predicated region body
PF: predicated region fallthrough
CT: control target
= control target key end

     0   :  { %v159_v1 = vmov 0.0   ;;  %vm160_vm0 = vmmov 0   ;;  %s200_s0 = inlined_call_operand.vmem [shape: bf16[16,32], index: 0, kind: input, shape index: {}]   ;;  %s201_s1 = inlined_call_operand.vmem [shape: bf16[32,16], index: 1, kind: input, shape index: {}]   ;;  %s202_s2 = inlined_call_operand.hbm [shape: bf16[16,16], index: 2, kind: output, shape index: {}]  }
   0x1   :  { %v132_v0 = vld [vmem:[%s201_s1] sm:$0xff]   ;;  %119 = vmatprep.subr.bf16.mxu0 %v159_v1  ;;  %v133_v2 = vld [vmem:[%s201_s1 + $0x8] sm:$0xff]   ;;  %123 = vmatprep.mubr.msk.bf16.mxu0 %vm160_vm0, %v159_v1 }
   0x2   :  { %120 = vmatpush3.bf16.msra.mxu0 %v132_v0 }
   0x3   :  { %121 = vmatprep.subr.bf16.mxu0 %v159_v1 }
   0x4   :  { %7 = vsyncpa [#allocation3], 0  ;;  %v134_v3 = vld [vmem:[%s200_s0] sm:$0xff]   ;;  %vm36_vm1 = vcmask 261120   ;;  %s161_s15 = smov [#allocation2]   ;;  %vm89_vm2 = vcmask 125952  }
   0x5   :  { %s97_s16 = sshll.u32 %s161_s15, 4  ;;  %s98_s16 = int_to_ptr.vmem [resolvable:$true] %s97_s16 }
   0x6   :  { %122 = vmatpush3.bf16.msra.mxu0 %v133_v2  ;;  %s135_s1 = scalar_lea.vmem %s98_s16, 128  ;;  %p140_p1 = scmp.lt.s32.totalorder %s98_s16, %s98_s16 }
   0x7   :  { %p136_p0 = scmp.ne.s32.totalorder %s98_s16, %s135_s1  ;;  %p141_p2 = scmp.lt.s32.totalorder %s135_s1, %s135_s1 }
   0x9   :  { %124 = vmatmul.mubr.msk.bf16.vlgmr.msra.gmra.mrb[0].mxu0 %vm36_vm1, %v134_v3  ;;  %p142_p3 = por %p141_p2, %p140_p1 }
   0xb   :  { %p143_p4 = pnand %p142_p3, %p136_p0 }
  0xdc   :  { %v74_v4 = vpop.f32.mrb[0].mxu0 }
  0xdd   :  { %v114_v5 = vpack.c.bf16 %v74_v4, %v74_v4  ;;  %v125_v6 = vpop.f32.mrb[1].mxu0 }
  0xde   :  { %v77_v7 = vpop.f32.mrb[2].mxu0 }
  0xdf   :  { %90 = vst.msk [vmem:[#allocation2] sm:$0xf] %vm89_vm2, %v114_v5  ;;  %v115_v8 = vpack.c.bf16 %v77_v7, %v77_v7  ;;  %v126_v9 = vpop.f32.mrb[3].mxu0 }
  0xe1   :  { %91 = vst.msk [vmem:[#allocation2 + $0x4] sm:$0xf] %vm89_vm2, %v115_v8 }
  0xe2   :  { %146 = shalt.err (!%p143_p4)
}
  0xe3   :  { %s147_s18 = scalar_lea.hbm %s202_s2, 128 }
  0xe4   :  { %p148_p5 = scmp.ne.s32.totalorder %s202_s2, %s147_s18  ;;  %p151_p6 = scmp.lt.u32.totalorder %s147_s18, %s202_s2 }
  0xe6   :  { %p153_p7 = pnand %p151_p6, %p148_p5 }
  0xe8   :  { %156 = shalt.err (!%p153_p7)
}
  0xe9   :  { %s162_s23 = smov 64   ;;  %s163_s24 = smov 4  }
  0xea   :  { %103 = dma.vmem_to_hbm [thread:$0]  %s98_s16, 128, %s202_s2, [#allocation3], %s162_s23, %s162_s23, %s163_s24  }
  0xeb   :  { %157 = dma.done.wait [#allocation3], 128  }
  0xec   :  { %158 = vsyncadd [#allocation3], 4294967168 }
  0xed   :  { %107 = vsyncpa [#allocation3], 1 }

</bundles_post_ra>
